<compile_context>
chip_gen: v7x
topology: tpu7x:2x2x1
jax: 0.10.0
libtpu: 0.0.40
codegen_flags: <defaults>
</compile_context>

<pallas_src>
import functools

import jax
import jax.numpy as jnp
from jax import lax
from jax.experimental import pallas as pl
from jax.experimental.pallas import tpu as pltpu

EPS = 1e-5  # PyTorch BatchNorm2d default


def _conv_bn_kernel(x_ref, w_ref, bn_ref, o_ref, sum_ref, sq_ref,
                    *, kh, kw, dil, pad, W, M, inv_count):
    """One grid step = (phase p, sample n).

    x_ref : (Cin, L)      flat H-padded image for sample n (+ small front/back pad)
    w_ref : (kh*kw, Cout, Cin)  per-tap weights
    bn_ref: (Cout, 2)     [:,0]=gamma, [:,1]=beta
    o_ref : (Cout, M)     M = Ho*Wo output pixels of sample n (lane-dense)
    sum_ref, sq_ref: (Cout, 1) VMEM scratch, persistent across the grid.
    """
    phase = pl.program_id(0)

    # Zero the BN accumulators on the very first grid step.
    @pl.when(jnp.logical_and(phase == 0, pl.program_id(1) == 0))
    def _():
        sum_ref[...] = jnp.zeros_like(sum_ref)
        sq_ref[...] = jnp.zeros_like(sq_ref)

    # Column index (within an output row) of every output pixel in this tile.
    cols = lax.broadcasted_iota(jnp.int32, (1, M), 1) % W

    cout = o_ref.shape[0]
    y = jnp.zeros((cout, M), jnp.float32)
    # In-kernel im2col: each tap (i, j) is a shifted contiguous slice of the flat
    # image; columns that spill over the (virtual) W boundary are masked to zero.
    for i in range(kh):
        for j in range(kw):
            start = i * dil * W + j * dil            # static offset into flat image
            patch = x_ref[:, start:start + M]        # (Cin, M)
            off = j * dil - pad                      # horizontal shift of this tap
            if off != 0:
                valid = (cols + off >= 0) & (cols + off < W)
                patch = jnp.where(valid, patch, 0.0)
            y = y + jnp.dot(w_ref[i * kw + j], patch,
                            preferred_element_type=jnp.float32)

    # Phase 0: accumulate per-channel sum and sum-of-squares (lane reductions).
    @pl.when(phase == 0)
    def _():
        sum_ref[...] += jnp.sum(y, axis=-1, keepdims=True)
        sq_ref[...] += jnp.sum(y * y, axis=-1, keepdims=True)

    # Phase 1: stats are final -> normalize (biased variance, eps, affine) and store.
    @pl.when(phase == 1)
    def _():
        mean = sum_ref[...] * inv_count                              # (Cout, 1)
        var = jnp.maximum(sq_ref[...] * inv_count - mean * mean, 0.0)
        inv_std = lax.rsqrt(var + EPS)
        gamma = bn_ref[:, 0:1]
        beta = bn_ref[:, 1:2]
        o_ref[...] = ((y - mean) * (inv_std * gamma) + beta).astype(o_ref.dtype)


@functools.partial(jax.jit, static_argnames=("stride", "padding", "dilation"))
def res_module_forward(x, conv_w, conv_b, bn_gamma, bn_beta,
                       *, stride=1, padding=1, dilation=1):
    """x: (N, Cin, H, W) f32 -> (N, Cout, Ho, Wo) f32 (Conv2d + training-mode BN)."""
    N, Cin, H, W = x.shape
    Cout, Cin_w, kh, kw = conv_w.shape
    assert Cin_w == Cin
    Ho = (H + 2 * padding - dilation * (kh - 1) - 1) // stride + 1
    Wo = (W + 2 * padding - dilation * (kw - 1) - 1) // stride + 1
    # TODO(synk): general stride / non-"same"-width configs need an im2col fallback;
    # the fused flat-shift kernel requires stride==1 and Wo==W (true for k=3,p=1,d=1).
    assert stride == 1 and Wo == W, "fused kernel supports stride=1, 'same'-width convs"

    M = Ho * Wo                      # output pixels per sample (lane dim of the tile)
    # Pad H with real zeros; the W boundary is handled by in-kernel masking.
    xp = jnp.pad(x, ((0, 0), (0, 0), (padding, padding), (0, 0)))
    xf = xp.reshape(N, Cin, (H + 2 * padding) * W)
    front = padding
    back = max(0, dilation * (kw - 1) - padding)
    xf = jnp.pad(xf, ((0, 0), (0, 0), (front, back)))       # (N, Cin, L)
    L = xf.shape[-1]
    assert (kh - 1) * dilation * W + (kw - 1) * dilation + M <= L

    # Per-tap weights, (kh*kw, Cout, Cin); conv bias is cancelled by BN mean
    # subtraction, so it is intentionally not passed to the kernel.
    w_taps = conv_w.transpose(2, 3, 0, 1).reshape(kh * kw, Cout, Cin)
    del conv_b
    bn_params = jnp.stack([bn_gamma, bn_beta], axis=1)       # (Cout, 2)

    kernel = functools.partial(
        _conv_bn_kernel, kh=kh, kw=kw, dil=dilation, pad=padding,
        W=W, M=M, inv_count=1.0 / float(N * M))

    # Grid: (phase, sample). Output index map stays at block 0 during phase 0 (no
    # writes happen then, so no garbage writebacks) and tracks the sample in phase 1.
    out = pl.pallas_call(
        kernel,
        out_shape=jax.ShapeDtypeStruct((N, Cout, M), jnp.float32),
        grid=(2, N),
        in_specs=[
            pl.BlockSpec((None, Cin, L), lambda p, n: (n, 0, 0)),
            pl.BlockSpec((kh * kw, Cout, Cin), lambda p, n: (0, 0, 0)),
            pl.BlockSpec((Cout, 2), lambda p, n: (0, 0)),
        ],
        out_specs=pl.BlockSpec((None, Cout, M), lambda p, n: (p * n, 0, 0)),
        scratch_shapes=[pltpu.VMEM((Cout, 1), jnp.float32),   # per-channel sum
                        pltpu.VMEM((Cout, 1), jnp.float32)],  # per-channel sum(x^2)
        compiler_params=pltpu.CompilerParams(
            # BN stats couple all grid steps through the scratch accumulators, so
            # both axes must stay sequential (no megacore split of the stats pass).
            dimension_semantics=("arbitrary", "arbitrary")),
    )(xf, w_taps, bn_params)

    # (N, Cout, Ho*Wo) -> (N, Cout, Ho, Wo): free reshape, already NCHW.
    return out.reshape(N, Cout, Ho, Wo)


def _reference(x, conv_w, conv_b, bn_gamma, bn_beta, stride, padding, dilation):
    y = lax.conv_general_dilated(
        x, conv_w, window_strides=(stride, stride),
        padding=[(padding, padding), (padding, padding)],
        rhs_dilation=(dilation, dilation),
        dimension_numbers=("NCHW", "OIHW", "NCHW"))
    y = y + conv_b.reshape(1, -1, 1, 1)
    mean = jnp.mean(y, axis=(0, 2, 3), keepdims=True)
    var = jnp.mean((y - mean) ** 2, axis=(0, 2, 3), keepdims=True)
    y = (y - mean) * lax.rsqrt(var + EPS)
    return y * bn_gamma.reshape(1, -1, 1, 1) + bn_beta.reshape(1, -1, 1, 1)


if __name__ == "__main__":
    # ResModule(in_channels=4, out_channels=8, kernel_size=3, stride=1,
    #           padding=1, dilation=1, bias=True)
    N, Cin, H, W = 2, 4, 16, 16
    Cout, ksz, stride, padding, dilation = 8, 3, 1, 1, 1

    key = jax.random.PRNGKey(0)
    kx, kwt, kb = jax.random.split(key, 3)
    x = jax.random.normal(kx, (N, Cin, H, W), dtype=jnp.float32)
    conv_w = jax.random.normal(kwt, (Cout, Cin, ksz, ksz), dtype=jnp.float32) * 0.1
    conv_b = jax.random.normal(kb, (Cout,), dtype=jnp.float32) * 0.1
    bn_gamma = jnp.ones((Cout,), dtype=jnp.float32)   # PyTorch BatchNorm2d default init
    bn_beta = jnp.zeros((Cout,), dtype=jnp.float32)

    out = res_module_forward(x, conv_w, conv_b, bn_gamma, bn_beta,
                             stride=stride, padding=padding, dilation=dilation)
    out = jax.block_until_ready(out)

    ref = _reference(x, conv_w, conv_b, bn_gamma, bn_beta, stride, padding, dilation)
    assert out.shape == (N, Cout, H, W)
    assert jnp.allclose(out, ref, atol=1e-4, rtol=1e-4), \
        float(jnp.max(jnp.abs(out - ref)))

    print("KERNEL_OK")
</pallas_src>

<mosaic_0001>
module attributes {stable_mosaic.version = 11 : i64} {
  func.func @_conv_bn_kernel(%arg0: i32, %arg1: i32, %arg2: memref<1x4x290xf32, #tpu.memory_space<vmem>>, %arg3: memref<9x8x4xf32, #tpu.memory_space<vmem>>, %arg4: memref<8x2xf32, #tpu.memory_space<vmem>>, %arg5: memref<1x8x256xf32, #tpu.memory_space<vmem>>, %arg6: memref<8x1xf32, #tpu.memory_space<vmem>>, %arg7: memref<8x1xf32, #tpu.memory_space<vmem>>) attributes {dimension_semantics = [#tpu.dimension_semantics<arbitrary>, #tpu.dimension_semantics<arbitrary>], iteration_bounds = array<i64: 2, 2>, scalar_prefetch = 0 : i64, scratch_operands = 2 : i64, tpu.core_type = #tpu.core_type<tc>, window_params = [{transform_indices = @transform_0, window_bounds = array<i64: 1, 4, 290>}, {pipeline_mode = #tpu.pipeline_mode<synchronous>, transform_indices = @transform_1, window_bounds = array<i64: 9, 8, 4>}, {pipeline_mode = #tpu.pipeline_mode<synchronous>, transform_indices = @transform_2, window_bounds = array<i64: 8, 2>}, {transform_indices = @transform_3, window_bounds = array<i64: 1, 8, 256>}]} {
    %c0_i32 = arith.constant 0 : i32
    %0 = arith.cmpi eq, %arg0, %c0_i32 : i32
    %c0_i32_0 = arith.constant 0 : i32
    %1 = arith.cmpi eq, %arg1, %c0_i32_0 : i32
    %2 = arith.andi %0, %1 : i1
    %3 = arith.extui %2 : i1 to i32
    %c0_i32_1 = arith.constant 0 : i32
    %4 = arith.cmpi ne, %3, %c0_i32_1 : i32
    scf.if %4 {
      %cst_87 = arith.constant 0.000000e+00 : f32
      %161 = vector.broadcast %cst_87 : f32 to vector<8x1xf32>
      %c0_88 = arith.constant 0 : index
      %c0_89 = arith.constant 0 : index
      %162 = vector.load %arg6[%c0_88, %c0_89] : memref<8x1xf32, #tpu.memory_space<vmem>>, vector<8x1xf32>
      tpu.vector_store %arg6[%c0_88, %c0_89], %161 {strides = array<i32>} : memref<8x1xf32, #tpu.memory_space<vmem>>, vector<8x1xf32>,
      %cst_90 = arith.constant 0.000000e+00 : f32
      %163 = vector.broadcast %cst_90 : f32 to vector<8x1xf32>
      %c0_91 = arith.constant 0 : index
      %c0_92 = arith.constant 0 : index
      %164 = vector.load %arg7[%c0_91, %c0_92] : memref<8x1xf32, #tpu.memory_space<vmem>>, vector<8x1xf32>
      tpu.vector_store %arg7[%c0_91, %c0_92], %163 {strides = array<i32>} : memref<8x1xf32, #tpu.memory_space<vmem>>, vector<8x1xf32>,
    } else {
    }
    %5 = tpu.iota {dimensions = array<i32: 1>} : vector<1x256xi32>
    %c16_i32 = arith.constant 16 : i32
    %c0_i32_2 = arith.constant 0 : i32
    %6 = arith.cmpi eq, %c16_i32, %c0_i32_2 : i32
    %c1_i32 = arith.constant 1 : i32
    %7 = arith.select %6, %c1_i32, %c16_i32 : i32
    %8 = vector.broadcast %7 : i32 to vector<1x256xi32>
    %9 = arith.remsi %5, %8 : vector<1x256xi32>
    %c0_i32_3 = arith.constant 0 : i32
    %10 = vector.broadcast %c0_i32_3 : i32 to vector<1x256xi32>
    %11 = arith.cmpi ne, %9, %10 : vector<1x256xi32>
    %c0_i32_4 = arith.constant 0 : i32
    %12 = vector.broadcast %c0_i32_4 : i32 to vector<1x256xi32>
    %13 = arith.cmpi slt, %9, %12 : vector<1x256xi32>
    %c0_i32_5 = arith.constant 0 : i32
    %14 = arith.cmpi slt, %7, %c0_i32_5 : i32
    %15 = vector.broadcast %14 : i1 to vector<1x256xi1>
    %16 = vector.broadcast %15 : vector<1x256xi1> to vector<1x256xi1>
    %17 = arith.xori %13, %16 : vector<1x256xi1>
    %18 = arith.andi %17, %11 : vector<1x256xi1>
    %19 = vector.broadcast %7 : i32 to vector<1x256xi32>
    %20 = arith.addi %9, %19 : vector<1x256xi32>
    %21 = arith.select %18, %20, %9 : vector<1x256xi1>, vector<1x256xi32>
    %cst = arith.constant 0.000000e+00 : f32
    %22 = vector.broadcast %cst : f32 to vector<8x256xf32>
    %c0 = arith.constant 0 : index
    %c0_6 = arith.constant 0 : index
    %c0_7 = arith.constant 0 : index
    %23 = vector.load %arg2[%c0, %c0_6, %c0_7] : memref<1x4x290xf32, #tpu.memory_space<vmem>>, vector<1x4x256xf32>
    %24 = vector.shape_cast %23 : vector<1x4x256xf32> to vector<4x256xf32>
    %c-1_i32 = arith.constant -1 : i32
    %25 = vector.broadcast %c-1_i32 : i32 to vector<1x256xi32>
    %26 = arith.addi %21, %25 : vector<1x256xi32>
    %c0_i32_8 = arith.constant 0 : i32
    %27 = vector.broadcast %c0_i32_8 : i32 to vector<1x256xi32>
    %28 = arith.cmpi sge, %26, %27 : vector<1x256xi32>
    %c-1_i32_9 = arith.constant -1 : i32
    %29 = vector.broadcast %c-1_i32_9 : i32 to vector<1x256xi32>
    %30 = arith.addi %21, %29 : vector<1x256xi32>
    %c16_i32_10 = arith.constant 16 : i32
    %31 = vector.broadcast %c16_i32_10 : i32 to vector<1x256xi32>
    %32 = arith.cmpi slt, %30, %31 : vector<1x256xi32>
    %33 = arith.andi %28, %32 : vector<1x256xi1>
    %cst_11 = arith.constant 0.000000e+00 : f32
    %34 = vector.shape_cast %33 : vector<1x256xi1> to vector<1x256xi1>
    %35 = vector.broadcast %34 : vector<1x256xi1> to vector<4x256xi1>
    %36 = vector.broadcast %cst_11 : f32 to vector<4x256xf32>
    %37 = arith.select %35, %24, %36 : vector<4x256xi1>, vector<4x256xf32>
    %c0_12 = arith.constant 0 : index
    %c0_13 = arith.constant 0 : index
    %c0_14 = arith.constant 0 : index
    %38 = vector.load %arg3[%c0_12, %c0_13, %c0_14] : memref<9x8x4xf32, #tpu.memory_space<vmem>>, vector<1x8x4xf32>
    %39 = vector.shape_cast %38 : vector<1x8x4xf32> to vector<8x4xf32>
    %cst_15 = arith.constant dense<0.000000e+00> : vector<8x256xf32>
    %40 = tpu.matmul %39, %37, %cst_15 {dimension_numbers = #tpu.dot_dimension_numbers<[1], [0], [0], [1], [0, 0, 1, 1], [], []>} : vector<8x4xf32>, vector<4x256xf32>, vector<8x256xf32> -> vector<8x256xf32>
    %41 = arith.addf %22, %40 : vector<8x256xf32>
    %c0_16 = arith.constant 0 : index
    %c0_17 = arith.constant 0 : index
    %c1 = arith.constant 1 : index
    %42 = vector.load %arg2[%c0_16, %c0_17, %c1] : memref<1x4x290xf32, #tpu.memory_space<vmem>>, vector<1x4x256xf32>
    %43 = vector.shape_cast %42 : vector<1x4x256xf32> to vector<4x256xf32>
    %c1_18 = arith.constant 1 : index
    %c0_19 = arith.constant 0 : index
    %c0_20 = arith.constant 0 : index
    %44 = vector.load %arg3[%c1_18, %c0_19, %c0_20] : memref<9x8x4xf32, #tpu.memory_space<vmem>>, vector<1x8x4xf32>
    %45 = vector.shape_cast %44 : vector<1x8x4xf32> to vector<8x4xf32>
    %cst_21 = arith.constant dense<0.000000e+00> : vector<8x256xf32>
    %46 = tpu.matmul %45, %43, %cst_21 {dimension_numbers = #tpu.dot_dimension_numbers<[1], [0], [0], [1], [0, 0, 1, 1], [], []>} : vector<8x4xf32>, vector<4x256xf32>, vector<8x256xf32> -> vector<8x256xf32>
    %47 = arith.addf %41, %46 : vector<8x256xf32>
    %c0_22 = arith.constant 0 : index
    %c0_23 = arith.constant 0 : index
    %c2 = arith.constant 2 : index
    %48 = vector.load %arg2[%c0_22, %c0_23, %c2] : memref<1x4x290xf32, #tpu.memory_space<vmem>>, vector<1x4x256xf32>
    %49 = vector.shape_cast %48 : vector<1x4x256xf32> to vector<4x256xf32>
    %c1_i32_24 = arith.constant 1 : i32
    %50 = vector.broadcast %c1_i32_24 : i32 to vector<1x256xi32>
    %51 = arith.addi %21, %50 : vector<1x256xi32>
    %c0_i32_25 = arith.constant 0 : i32
    %52 = vector.broadcast %c0_i32_25 : i32 to vector<1x256xi32>
    %53 = arith.cmpi sge, %51, %52 : vector<1x256xi32>
    %c1_i32_26 = arith.constant 1 : i32
    %54 = vector.broadcast %c1_i32_26 : i32 to vector<1x256xi32>
    %55 = arith.addi %21, %54 : vector<1x256xi32>
    %c16_i32_27 = arith.constant 16 : i32
    %56 = vector.broadcast %c16_i32_27 : i32 to vector<1x256xi32>
    %57 = arith.cmpi slt, %55, %56 : vector<1x256xi32>
    %58 = arith.andi %53, %57 : vector<1x256xi1>
    %cst_28 = arith.constant 0.000000e+00 : f32
    %59 = vector.shape_cast %58 : vector<1x256xi1> to vector<1x256xi1>
    %60 = vector.broadcast %59 : vector<1x256xi1> to vector<4x256xi1>
    %61 = vector.broadcast %cst_28 : f32 to vector<4x256xf32>
    %62 = arith.select %60, %49, %61 : vector<4x256xi1>, vector<4x256xf32>
    %c2_29 = arith.constant 2 : index
    %c0_30 = arith.constant 0 : index
    %c0_31 = arith.constant 0 : index
    %63 = vector.load %arg3[%c2_29, %c0_30, %c0_31] : memref<9x8x4xf32, #tpu.memory_space<vmem>>, vector<1x8x4xf32>
    %64 = vector.shape_cast %63 : vector<1x8x4xf32> to vector<8x4xf32>
    %cst_32 = arith.constant dense<0.000000e+00> : vector<8x256xf32>
    %65 = tpu.matmul %64, %62, %cst_32 {dimension_numbers = #tpu.dot_dimension_numbers<[1], [0], [0], [1], [0, 0, 1, 1], [], []>} : vector<8x4xf32>, vector<4x256xf32>, vector<8x256xf32> -> vector<8x256xf32>
    %66 = arith.addf %47, %65 : vector<8x256xf32>
    %c0_33 = arith.constant 0 : index
    %c0_34 = arith.constant 0 : index
    %c16 = arith.constant 16 : index
    %67 = vector.load %arg2[%c0_33, %c0_34, %c16] : memref<1x4x290xf32, #tpu.memory_space<vmem>>, vector<1x4x256xf32>
    %68 = vector.shape_cast %67 : vector<1x4x256xf32> to vector<4x256xf32>
    %c-1_i32_35 = arith.constant -1 : i32
    %69 = vector.broadcast %c-1_i32_35 : i32 to vector<1x256xi32>
    %70 = arith.addi %21, %69 : vector<1x256xi32>
    %c0_i32_36 = arith.constant 0 : i32
    %71 = vector.broadcast %c0_i32_36 : i32 to vector<1x256xi32>
    %72 = arith.cmpi sge, %70, %71 : vector<1x256xi32>
    %c-1_i32_37 = arith.constant -1 : i32
    %73 = vector.broadcast %c-1_i32_37 : i32 to vector<1x256xi32>
    %74 = arith.addi %21, %73 : vector<1x256xi32>
    %c16_i32_38 = arith.constant 16 : i32
    %75 = vector.broadcast %c16_i32_38 : i32 to vector<1x256xi32>
    %76 = arith.cmpi slt, %74, %75 : vector<1x256xi32>
    %77 = arith.andi %72, %76 : vector<1x256xi1>
    %cst_39 = arith.constant 0.000000e+00 : f32
    %78 = vector.shape_cast %77 : vector<1x256xi1> to vector<1x256xi1>
    %79 = vector.broadcast %78 : vector<1x256xi1> to vector<4x256xi1>
    %80 = vector.broadcast %cst_39 : f32 to vector<4x256xf32>
    %81 = arith.select %79, %68, %80 : vector<4x256xi1>, vector<4x256xf32>
    %c3 = arith.constant 3 : index
    %c0_40 = arith.constant 0 : index
    %c0_41 = arith.constant 0 : index
    %82 = vector.load %arg3[%c3, %c0_40, %c0_41] : memref<9x8x4xf32, #tpu.memory_space<vmem>>, vector<1x8x4xf32>
    %83 = vector.shape_cast %82 : vector<1x8x4xf32> to vector<8x4xf32>
    %cst_42 = arith.constant dense<0.000000e+00> : vector<8x256xf32>
    %84 = tpu.matmul %83, %81, %cst_42 {dimension_numbers = #tpu.dot_dimension_numbers<[1], [0], [0], [1], [0, 0, 1, 1], [], []>} : vector<8x4xf32>, vector<4x256xf32>, vector<8x256xf32> -> vector<8x256xf32>
    %85 = arith.addf %66, %84 : vector<8x256xf32>
    %c0_43 = arith.constant 0 : index
    %c0_44 = arith.constant 0 : index
    %c17 = arith.constant 17 : index
    %86 = vector.load %arg2[%c0_43, %c0_44, %c17] : memref<1x4x290xf32, #tpu.memory_space<vmem>>, vector<1x4x256xf32>
    %87 = vector.shape_cast %86 : vector<1x4x256xf32> to vector<4x256xf32>
    %c4 = arith.constant 4 : index
    %c0_45 = arith.constant 0 : index
    %c0_46 = arith.constant 0 : index
    %88 = vector.load %arg3[%c4, %c0_45, %c0_46] : memref<9x8x4xf32, #tpu.memory_space<vmem>>, vector<1x8x4xf32>
    %89 = vector.shape_cast %88 : vector<1x8x4xf32> to vector<8x4xf32>
    %cst_47 = arith.constant dense<0.000000e+00> : vector<8x256xf32>
    %90 = tpu.matmul %89, %87, %cst_47 {dimension_numbers = #tpu.dot_dimension_numbers<[1], [0], [0], [1], [0, 0, 1, 1], [], []>} : vector<8x4xf32>, vector<4x256xf32>, vector<8x256xf32> -> vector<8x256xf32>
    %91 = arith.addf %85, %90 : vector<8x256xf32>
    %c0_48 = arith.constant 0 : index
    %c0_49 = arith.constant 0 : index
    %c18 = arith.constant 18 : index
    %92 = vector.load %arg2[%c0_48, %c0_49, %c18] : memref<1x4x290xf32, #tpu.memory_space<vmem>>, vector<1x4x256xf32>
    %93 = vector.shape_cast %92 : vector<1x4x256xf32> to vector<4x256xf32>
    %c1_i32_50 = arith.constant 1 : i32
    %94 = vector.broadcast %c1_i32_50 : i32 to vector<1x256xi32>
    %95 = arith.addi %21, %94 : vector<1x256xi32>
    %c0_i32_51 = arith.constant 0 : i32
    %96 = vector.broadcast %c0_i32_51 : i32 to vector<1x256xi32>
    %97 = arith.cmpi sge, %95, %96 : vector<1x256xi32>
    %c1_i32_52 = arith.constant 1 : i32
    %98 = vector.broadcast %c1_i32_52 : i32 to vector<1x256xi32>
    %99 = arith.addi %21, %98 : vector<1x256xi32>
    %c16_i32_53 = arith.constant 16 : i32
    %100 = vector.broadcast %c16_i32_53 : i32 to vector<1x256xi32>
    %101 = arith.cmpi slt, %99, %100 : vector<1x256xi32>
    %102 = arith.andi %97, %101 : vector<1x256xi1>
    %cst_54 = arith.constant 0.000000e+00 : f32
    %103 = vector.shape_cast %102 : vector<1x256xi1> to vector<1x256xi1>
    %104 = vector.broadcast %103 : vector<1x256xi1> to vector<4x256xi1>
    %105 = vector.broadcast %cst_54 : f32 to vector<4x256xf32>
    %106 = arith.select %104, %93, %105 : vector<4x256xi1>, vector<4x256xf32>
    %c5 = arith.constant 5 : index
    %c0_55 = arith.constant 0 : index
    %c0_56 = arith.constant 0 : index
    %107 = vector.load %arg3[%c5, %c0_55, %c0_56] : memref<9x8x4xf32, #tpu.memory_space<vmem>>, vector<1x8x4xf32>
    %108 = vector.shape_cast %107 : vector<1x8x4xf32> to vector<8x4xf32>
    %cst_57 = arith.constant dense<0.000000e+00> : vector<8x256xf32>
    %109 = tpu.matmul %108, %106, %cst_57 {dimension_numbers = #tpu.dot_dimension_numbers<[1], [0], [0], [1], [0, 0, 1, 1], [], []>} : vector<8x4xf32>, vector<4x256xf32>, vector<8x256xf32> -> vector<8x256xf32>
    %110 = arith.addf %91, %109 : vector<8x256xf32>
    %c0_58 = arith.constant 0 : index
    %c0_59 = arith.constant 0 : index
    %c32 = arith.constant 32 : index
    %111 = vector.load %arg2[%c0_58, %c0_59, %c32] : memref<1x4x290xf32, #tpu.memory_space<vmem>>, vector<1x4x256xf32>
    %112 = vector.shape_cast %111 : vector<1x4x256xf32> to vector<4x256xf32>
    %c-1_i32_60 = arith.constant -1 : i32
    %113 = vector.broadcast %c-1_i32_60 : i32 to vector<1x256xi32>
    %114 = arith.addi %21, %113 : vector<1x256xi32>
    %c0_i32_61 = arith.constant 0 : i32
    %115 = vector.broadcast %c0_i32_61 : i32 to vector<1x256xi32>
    %116 = arith.cmpi sge, %114, %115 : vector<1x256xi32>
    %c-1_i32_62 = arith.constant -1 : i32
    %117 = vector.broadcast %c-1_i32_62 : i32 to vector<1x256xi32>
    %118 = arith.addi %21, %117 : vector<1x256xi32>
    %c16_i32_63 = arith.constant 16 : i32
    %119 = vector.broadcast %c16_i32_63 : i32 to vector<1x256xi32>
    %120 = arith.cmpi slt, %118, %119 : vector<1x256xi32>
    %121 = arith.andi %116, %120 : vector<1x256xi1>
    %cst_64 = arith.constant 0.000000e+00 : f32
    %122 = vector.shape_cast %121 : vector<1x256xi1> to vector<1x256xi1>
    %123 = vector.broadcast %122 : vector<1x256xi1> to vector<4x256xi1>
    %124 = vector.broadcast %cst_64 : f32 to vector<4x256xf32>
    %125 = arith.select %123, %112, %124 : vector<4x256xi1>, vector<4x256xf32>
    %c6 = arith.constant 6 : index
    %c0_65 = arith.constant 0 : index
    %c0_66 = arith.constant 0 : index
    %126 = vector.load %arg3[%c6, %c0_65, %c0_66] : memref<9x8x4xf32, #tpu.memory_space<vmem>>, vector<1x8x4xf32>
    %127 = vector.shape_cast %126 : vector<1x8x4xf32> to vector<8x4xf32>
    %cst_67 = arith.constant dense<0.000000e+00> : vector<8x256xf32>
    %128 = tpu.matmul %127, %125, %cst_67 {dimension_numbers = #tpu.dot_dimension_numbers<[1], [0], [0], [1], [0, 0, 1, 1], [], []>} : vector<8x4xf32>, vector<4x256xf32>, vector<8x256xf32> -> vector<8x256xf32>
    %129 = arith.addf %110, %128 : vector<8x256xf32>
    %c0_68 = arith.constant 0 : index
    %c0_69 = arith.constant 0 : index
    %c33 = arith.constant 33 : index
    %130 = vector.load %arg2[%c0_68, %c0_69, %c33] : memref<1x4x290xf32, #tpu.memory_space<vmem>>, vector<1x4x256xf32>
    %131 = vector.shape_cast %130 : vector<1x4x256xf32> to vector<4x256xf32>
    %c7 = arith.constant 7 : index
    %c0_70 = arith.constant 0 : index
    %c0_71 = arith.constant 0 : index
    %132 = vector.load %arg3[%c7, %c0_70, %c0_71] : memref<9x8x4xf32, #tpu.memory_space<vmem>>, vector<1x8x4xf32>
    %133 = vector.shape_cast %132 : vector<1x8x4xf32> to vector<8x4xf32>
    %cst_72 = arith.constant dense<0.000000e+00> : vector<8x256xf32>
    %134 = tpu.matmul %133, %131, %cst_72 {dimension_numbers = #tpu.dot_dimension_numbers<[1], [0], [0], [1], [0, 0, 1, 1], [], []>} : vector<8x4xf32>, vector<4x256xf32>, vector<8x256xf32> -> vector<8x256xf32>
    %135 = arith.addf %129, %134 : vector<8x256xf32>
    %c0_73 = arith.constant 0 : index
    %c0_74 = arith.constant 0 : index
    %c34 = arith.constant 34 : index
    %136 = vector.load %arg2[%c0_73, %c0_74, %c34] : memref<1x4x290xf32, #tpu.memory_space<vmem>>, vector<1x4x256xf32>
    %137 = vector.shape_cast %136 : vector<1x4x256xf32> to vector<4x256xf32>
    %c1_i32_75 = arith.constant 1 : i32
    %138 = vector.broadcast %c1_i32_75 : i32 to vector<1x256xi32>
    %139 = arith.addi %21, %138 : vector<1x256xi32>
    %c0_i32_76 = arith.constant 0 : i32
    %140 = vector.broadcast %c0_i32_76 : i32 to vector<1x256xi32>
    %141 = arith.cmpi sge, %139, %140 : vector<1x256xi32>
    %c1_i32_77 = arith.constant 1 : i32
    %142 = vector.broadcast %c1_i32_77 : i32 to vector<1x256xi32>
    %143 = arith.addi %21, %142 : vector<1x256xi32>
    %c16_i32_78 = arith.constant 16 : i32
    %144 = vector.broadcast %c16_i32_78 : i32 to vector<1x256xi32>
    %145 = arith.cmpi slt, %143, %144 : vector<1x256xi32>
    %146 = arith.andi %141, %145 : vector<1x256xi1>
    %cst_79 = arith.constant 0.000000e+00 : f32
    %147 = vector.shape_cast %146 : vector<1x256xi1> to vector<1x256xi1>
    %148 = vector.broadcast %147 : vector<1x256xi1> to vector<4x256xi1>
    %149 = vector.broadcast %cst_79 : f32 to vector<4x256xf32>
    %150 = arith.select %148, %137, %149 : vector<4x256xi1>, vector<4x256xf32>
    %c8 = arith.constant 8 : index
    %c0_80 = arith.constant 0 : index
    %c0_81 = arith.constant 0 : index
    %151 = vector.load %arg3[%c8, %c0_80, %c0_81] : memref<9x8x4xf32, #tpu.memory_space<vmem>>, vector<1x8x4xf32>
    %152 = vector.shape_cast %151 : vector<1x8x4xf32> to vector<8x4xf32>
    %cst_82 = arith.constant dense<0.000000e+00> : vector<8x256xf32>
    %153 = tpu.matmul %152, %150, %cst_82 {dimension_numbers = #tpu.dot_dimension_numbers<[1], [0], [0], [1], [0, 0, 1, 1], [], []>} : vector<8x4xf32>, vector<4x256xf32>, vector<8x256xf32> -> vector<8x256xf32>
    %154 = arith.addf %135, %153 : vector<8x256xf32>
    %c0_i32_83 = arith.constant 0 : i32
    %155 = arith.cmpi eq, %arg0, %c0_i32_83 : i32
    %156 = arith.extui %155 : i1 to i32
    %c0_i32_84 = arith.constant 0 : i32
    %157 = arith.cmpi ne, %156, %c0_i32_84 : i32
    scf.if %157 {
      %c0_87 = arith.constant 0 : index
      %c0_88 = arith.constant 0 : index
      %161 = vector.load %arg6[%c0_87, %c0_88] : memref<8x1xf32, #tpu.memory_space<vmem>>, vector<8x1xf32>
      %cst_89 = arith.constant dense<0.000000e+00> : vector<8xf32>
      %162 = vector.multi_reduction <add>, %154, %cst_89 [1] : vector<8x256xf32> to vector<8xf32>
      %163 = vector.shape_cast %162 : vector<8xf32> to vector<8x1xf32>
      %164 = arith.addf %161, %163 : vector<8x1xf32>
      %c0_90 = arith.constant 0 : index
      %c0_91 = arith.constant 0 : index
      %165 = vector.load %arg6[%c0_90, %c0_91] : memref<8x1xf32, #tpu.memory_space<vmem>>, vector<8x1xf32>
      tpu.vector_store %arg6[%c0_90, %c0_91], %164 {strides = array<i32>} : memref<8x1xf32, #tpu.memory_space<vmem>>, vector<8x1xf32>,
      %c0_92 = arith.constant 0 : index
      %c0_93 = arith.constant 0 : index
      %166 = vector.load %arg7[%c0_92, %c0_93] : memref<8x1xf32, #tpu.memory_space<vmem>>, vector<8x1xf32>
      %167 = arith.mulf %154, %154 : vector<8x256xf32>
      %cst_94 = arith.constant dense<0.000000e+00> : vector<8xf32>
      %168 = vector.multi_reduction <add>, %167, %cst_94 [1] : vector<8x256xf32> to vector<8xf32>
      %169 = vector.shape_cast %168 : vector<8xf32> to vector<8x1xf32>
      %170 = arith.addf %166, %169 : vector<8x1xf32>
      %c0_95 = arith.constant 0 : index
      %c0_96 = arith.constant 0 : index
      %171 = vector.load %arg7[%c0_95, %c0_96] : memref<8x1xf32, #tpu.memory_space<vmem>>, vector<8x1xf32>
      tpu.vector_store %arg7[%c0_95, %c0_96], %170 {strides = array<i32>} : memref<8x1xf32, #tpu.memory_space<vmem>>, vector<8x1xf32>,
    } else {
    }
    %c1_i32_85 = arith.constant 1 : i32
    %158 = arith.cmpi eq, %arg0, %c1_i32_85 : i32
    %159 = arith.extui %158 : i1 to i32
    %c0_i32_86 = arith.constant 0 : i32
    %160 = arith.cmpi ne, %159, %c0_i32_86 : i32
    scf.if %160 {
      %c0_87 = arith.constant 0 : index
      %c0_88 = arith.constant 0 : index
      %161 = vector.load %arg6[%c0_87, %c0_88] : memref<8x1xf32, #tpu.memory_space<vmem>>, vector<8x1xf32>
      %cst_89 = arith.constant 0.001953125 : f32
      %162 = vector.broadcast %cst_89 : f32 to vector<8x1xf32>
      %163 = arith.mulf %161, %162 : vector<8x1xf32>
      %c0_90 = arith.constant 0 : index
      %c0_91 = arith.constant 0 : index
      %164 = vector.load %arg7[%c0_90, %c0_91] : memref<8x1xf32, #tpu.memory_space<vmem>>, vector<8x1xf32>
      %cst_92 = arith.constant 0.001953125 : f32
      %165 = vector.broadcast %cst_92 : f32 to vector<8x1xf32>
      %166 = arith.mulf %164, %165 : vector<8x1xf32>
      %167 = arith.mulf %163, %163 : vector<8x1xf32>
      %168 = arith.subf %166, %167 : vector<8x1xf32>
      %cst_93 = arith.constant 0.000000e+00 : f32
      %169 = vector.broadcast %cst_93 : f32 to vector<8x1xf32>
      %170 = arith.maximumf %168, %169 : vector<8x1xf32>
      %cst_94 = arith.constant 9.99999974E-6 : f32
      %171 = vector.broadcast %cst_94 : f32 to vector<8x1xf32>
      %172 = arith.addf %170, %171 : vector<8x1xf32>
      %173 = math.rsqrt %172 : vector<8x1xf32>
      %c0_95 = arith.constant 0 : index
      %c0_96 = arith.constant 0 : index
      %174 = vector.load %arg4[%c0_95, %c0_96] : memref<8x2xf32, #tpu.memory_space<vmem>>, vector<8x1xf32>
      %c0_97 = arith.constant 0 : index
      %c1_98 = arith.constant 1 : index
      %175 = vector.load %arg4[%c0_97, %c1_98] : memref<8x2xf32, #tpu.memory_space<vmem>>, vector<8x1xf32>
      %176 = vector.broadcast %163 : vector<8x1xf32> to vector<8x256xf32>
      %177 = arith.subf %154, %176 : vector<8x256xf32>
      %178 = arith.mulf %173, %174 : vector<8x1xf32>
      %179 = vector.broadcast %178 : vector<8x1xf32> to vector<8x256xf32>
      %180 = arith.mulf %177, %179 : vector<8x256xf32>
      %181 = vector.broadcast %175 : vector<8x1xf32> to vector<8x256xf32>
      %182 = arith.addf %180, %181 : vector<8x256xf32>
      %c0_99 = arith.constant 0 : index
      %c0_100 = arith.constant 0 : index
      %c0_101 = arith.constant 0 : index
      %183 = vector.load %arg5[%c0_99, %c0_100, %c0_101] : memref<1x8x256xf32, #tpu.memory_space<vmem>>, vector<1x8x256xf32>
      %184 = vector.shape_cast %183 : vector<1x8x256xf32> to vector<8x256xf32>
      %185 = vector.shape_cast %182 : vector<8x256xf32> to vector<1x8x256xf32>
      tpu.vector_store %arg5[%c0_99, %c0_100, %c0_101], %185 {strides = array<i32>} : memref<1x8x256xf32, #tpu.memory_space<vmem>>, vector<1x8x256xf32>,
    } else {
    }
    return
  }
  func.func @transform_0(%arg0: i32, %arg1: i32) -> (i32, i32, i32) {
    %c0_i32 = arith.constant 0 : i32
    %c0_i32_0 = arith.constant 0 : i32
    %c0_i32_1 = arith.constant 0 : i32
    return %arg1, %c0_i32, %c0_i32_0 : i32, i32, i32
  }
  func.func @transform_1(%arg0: i32, %arg1: i32) -> (i32, i32, i32) {
    %c0_i32 = arith.constant 0 : i32
    %c0_i32_0 = arith.constant 0 : i32
    %c0_i32_1 = arith.constant 0 : i32
    %c0_i32_2 = arith.constant 0 : i32
    return %c0_i32, %c0_i32_0, %c0_i32_1 : i32, i32, i32
  }
  func.func @transform_2(%arg0: i32, %arg1: i32) -> (i32, i32) {
    %c0_i32 = arith.constant 0 : i32
    %c0_i32_0 = arith.constant 0 : i32
    %c0_i32_1 = arith.constant 0 : i32
    return %c0_i32, %c0_i32_0 : i32, i32
  }
  func.func @transform_3(%arg0: i32, %arg1: i32) -> (i32, i32, i32) {
    %0 = arith.muli %arg0, %arg1 : i32
    %c0_i32 = arith.constant 0 : i32
    %c0_i32_0 = arith.constant 0 : i32
    %c0_i32_1 = arith.constant 0 : i32
    return %0, %c0_i32, %c0_i32_0 : i32, i32, i32
  }
}

</mosaic_0001>

<bundles_post_ra>
// kernel: res_module_forward.1
= control target key start
LH: loop header
LB: loop body
LE: loop exit
PB: predicated region body
PF: predicated region fallthrough
CT: control target
= control target key end

     0   :  { %s1451_s12 = smov 0   ;;  %s1453_s13 = smov 0   ;;  %s1655_s0 = inlined_call_operand.vmem [shape: f32[2,4,290], index: 0, kind: input, shape index: {}]   ;;  %s1656_s1 = inlined_call_operand.vmem [shape: f32[9,8,4], index: 1, kind: input, shape index: {}]   ;;  %s1657_s2 = inlined_call_operand.vmem [shape: f32[8,2], index: 2, kind: input, shape index: {}]   ;;  %s1658_s3 = inlined_call_operand.vmem [shape: f32[2,8,256], index: 3, kind: output, shape index: {}]  }
   0x1   :  { %s1455_s14 = smov 0   ;;  %s1457_s15 = smov 0  }
   0x2   :  { %s1459_s16 = smov 0  }
   0x3 LB: > { %s22_s17 = sadd.s32 1, %s1409_s14  ;;  %s25_s18 = sadd.s32 1, %s1413_s15  ;;  %s1417_s16 = sphi %s1459_s16, %s13_s16   ;;  %s1413_s15 = sphi %s1457_s15, %s1662_s15   ;;  %s1409_s14 = sphi %s1455_s14, %s1661_s14   ;;  %s1405_s13 = sphi %s1453_s13, %s1660_s13   ;;  %s1401_s12 = sphi %s1451_s12, %s1659_s12  }
   0x4   : > { %p23_p0 = scmp.ge.s32.totalorder %s22_s17, 2  ;;  %p1260_p1 = scmp.ge.s32.totalorder %s1417_s16, 1 }
   0x5   : > { %p151_p2 = scmp.lt.s32.totalorder %s1417_s16, 5 }
   0x6   : > { %s1664_s17 = smov (%p23_p0, %s22_s17), 0  ;;  %s1666_s18 = smov (!%p23_p0, %s25_s18), %s1413_s15 }
   0x7   : > { %p152_p3 = pnand %p1260_p1, %p151_p2  ;;  %p27_p4 = scmp.ge.s32.totalorder %s1666_s18, 2 }
   0x8   : > { %p176_p5 = scmp.lt.s32.totalorder (!%p152_p3), %s1401_s12, 1  ;;  %s181_s19 = smul.u32 (!%p152_p3), %s1401_s12, %s1405_s13 }
   0x9   : > { %s1668_s18 = smov (%p27_p4, %s1666_s18), 0  ;;  %155 = sbr.rel (%p152_p3) target bundleno = 717 (0x2cd), region = 32 }
   0xa   : > { %p188_p6 = scmp.eq.s32.totalorder (!%p152_p3), %s1405_s13, 0  ;;  %p189_p7 = scmp.eq.s32.totalorder (!%p152_p3), %s1401_s12, 0 }
   0xb   : > { %p182_p8 = scmp.lt.s32.totalorder (!%p152_p3), %s181_s19, 1 }
   0xc   : > { %p190_p9 = pnand (!%p152_p3), %p189_p7, %p188_p6 }
  0x10   : > { %s1670_s12 = smov (!%p176_p5, %s1401_s12), 1  ;;  %s1672_s19 = smov (!%p182_p8, %s181_s19), 1 }
  0x11   : > { %s1320_s20 = smul.u32 12, %s1670_s12  ;;  %s1303_s24 = sshll.u32 %s1672_s19, 4  ;;  %vm194_vm0 = vcmask (!%p190_p9), 7168   ;;  %v1419_v0 = vmov (!%p190_p9), 0.0  }
  0x12   : > { %s1493_s27 = scalar_lea.vmem %s1658_s3, %s1303_s24  ;;  %193 = sbr.rel (%p190_p9) target bundleno = 25 (0x19), region = 36  ;;  %195 = vst.msk [vmem:[#allocation2] sm:$0xff] (!%p190_p9), %vm194_vm0, %v1419_v0  ;;  %196 = vst.msk [vmem:[#allocation3] sm:$0xff] (!%p190_p9), %vm194_vm0, %v1419_v0 }
  0x13   : > { %s1488_s23 = scalar_lea.vmem %s1655_s0, %s1320_s20 }
  0x19 PF: > { %v1496_v1 = vld [vmem:[%s1488_s23] sm:$0xff]  ;;  %s1420_s28 = smov 111   ;;  %v633_v3 = vld [vmem:[%s1488_s23 + $0x8] sm:$0xf]  ;;  %s1421_s29 = smov 110   ;;  %v1422_v4 = vmov 0.0   ;;  %v197_v12 = vlaneseq }
  0x1a   : > { %639 = vrot.lane.b32.xlu1 %v1496_v1, %s1420_s28  ;;  %v1501_v2 = vcombine.high %v1496_v1, %v1496_v1  ;;  %719 = vmatprep.mubr.f32.mxu0 %v1422_v4  ;;  %v729_v5 = vld [vmem:[%s1488_s23 + $0x8] sm:$0xf]  ;;  %s1423_s30 = smov 127   ;;  %s1424_s4 = smov 96   ;;  %vm260_vm1 = vcmask 1043456   ;;  %vm645_vm2 = vcmask 908288  }
  0x1b   : > { %329 = vmatprep.mubr.f32.mxu1 %v1422_v4  ;;  %v243_v6 = vld [vmem:[%s1488_s23 + $0x8] sm:$0xf]  ;;  %s1425_s5 = smov 126   ;;  %s1426_s6 = smov 95   ;;  %v198_v13 = vand.u32 127, %v197_v12  ;;  %vm256_vm3 = vcmask 31744  }
  0x1c   : > { %641 = vrot.lane.b32.xlu0 %v1501_v2, %s1420_s28  ;;  %v831_v7 = vld [vmem:[%s1488_s23 + $0x8] sm:$0xf]  ;;  %s1427_s7 = smov 112   ;;  %s1428_s8 = smov 94   ;;  %v1279_v24 = vld [vmem:[%s1656_s1 + $0x20] sm:$0xff]  ;;  %vm739_vm4 = vcmask 900096  }
  0x1d   : > { %v417_v8 = vld [vmem:[%s1488_s23 + $0x8] sm:$0xf]  ;;  %v199_v14 = vadd.s32 128, %v198_v13  ;;  %v204_v18 = vand.u32 15, %v198_v13  ;;  %vm253_vm7 = vcmask 1039360   ;;  %vm841_vm10 = vcmask 785408  }
  0x1e   : > { %735 = vrot.lane.b32.xlu1 %v1501_v2, %s1421_s29  ;;  %v933_v9 = vld [vmem:[%s1488_s23 + $0x8] sm:$0xf]  ;;  %vm439_vm11 = vcmask 1031168   ;;  %v1287_v50 = vld [vmem:[%s1656_s1 + $0x30] sm:$0xff]  ;;  %v242_v53 = vld [vmem:[%s1656_s1] sm:$0xff]  ;;  %vm945_vm12 = vcmask 777216  }
  0x1f   : > { %v531_v10 = vld [vmem:[%s1488_s23 + $0x8] sm:$0xf]  ;;  %v211_v16 = vand.u32 15, %v199_v14  ;;  %v1530_v23 = vadd.s32 1, %v204_v18  ;;  %v1548_v35 = vadd.s32 4294967295, %v204_v18  ;;  %v1271_v62 = vld [vmem:[%s1656_s1 + $0x10] sm:$0xff] }
  0x20   : > { %643 = vrot.lane.b32.xlu0 %v633_v3, %s1420_s28  ;;  %v1029_v11 = vld [vmem:[%s1488_s23 + $0x8] sm:$0xf]  ;;  %v1291_v0 = vld [vmem:[%s1656_s1 + $0x38] sm:$0xff]  ;;  %vm541_vm13 = vcmask 916480   ;;  %vm1039_vm14 = vcmask 769024   ;;  %p1299_p10 = scmp.ne.s32.totalorder %s1405_s13, 0 }
  0x21   : > { %v1528_v20 = vadd.s32 1, %v211_v16  ;;  %vm422_vm6 = vcmp.lt.s32.totalorder %v1530_v23, 16  ;;  %v1544_v32 = vadd.s32 4294967295, %v211_v16  ;;  %v1283_v37 = vld [vmem:[%s1656_s1 + $0x28] sm:$0xff]  ;;  %vm227_vm9 = vcmp.ge.s32.totalorder %v1548_v35, 0  ;;  %v1275_v16 = vld [vmem:[%s1656_s1 + $0x18] sm:$0xff] }
  0x22   : > { %249 = vrot.lane.b32.xlu1 %v1501_v2, %s1423_s30  ;;  %v1264_v40 = vld [vmem:[%s1656_s1 + $0x8] sm:$0xff]  ;;  %v240_v43 = vsel %vm227_vm9, %v1496_v1, 0.0  ;;  %vm1138_vm15 = vcmask (!%p1299_p10), 7168  }
  0x23   : > { %vm423_vm5 = vcmp.lt.s32.totalorder %v1528_v20, 16  ;;  %vm228_vm8 = vcmp.ge.s32.totalorder %v1544_v32, 0 }
  0x24   : > { %737 = vrot.lane.b32.xlu0 %v729_v5, %s1421_s29  ;;  %v241_v41 = vsel %vm228_vm8, %v1501_v2, 0.0 }
  0x26   : > { %733 = vrot.lane.b32.xlu1 %v1496_v1, %s1421_s29 }
  0x28   : > { %251 = vrot.lane.b32.xlu0 %v243_v6, %s1423_s30 }
  0x2a   : > { %837 = vrot.lane.b32.xlu1 %v1501_v2, %s1424_s4 }
  0x2c   : > { %247 = vrot.lane.b32.xlu0 %v1496_v1, %s1423_s30 }
  0x2e   : > { %835 = vrot.lane.b32.xlu1 %v1496_v1, %s1424_s4 }
  0x30   : > { %839 = vrot.lane.b32.xlu0 %v831_v7, %s1424_s4 }
  0x32   : > { %437 = vrot.lane.b32.xlu1 %v417_v8, %s1425_s5 }
  0x34   : > { %435 = vrot.lane.b32.xlu0 %v1501_v2, %s1425_s5 }
  0x36   : > { %941 = vrot.lane.b32.xlu1 %v1501_v2, %s1426_s6 }
  0x38   : > { %433 = vrot.lane.b32.xlu0 %v1496_v1, %s1425_s5 }
  0x3a   : > { %939 = vrot.lane.b32.xlu1 %v1496_v1, %s1426_s6 }
  0x3c   : > { %943 = vrot.lane.b32.xlu0 %v933_v9, %s1426_s6 }
  0x3e   : > { %539 = vrot.lane.b32.xlu1 %v531_v10, %s1427_s7 }
  0x40   : > { %537 = vrot.lane.b32.xlu0 %v1501_v2, %s1427_s7 }
  0x42   : > { %1037 = vrot.lane.b32.xlu1 %v1029_v11, %s1428_s8 }
  0x44   : > { %1035 = vrot.lane.b32.xlu0 %v1501_v2, %s1428_s8 }
  0x46   : > { %1033 = vrot.lane.b32.xlu1 %v1496_v1, %s1428_s8 }
  0x48   : > { %535 = vrot.lane.b32.xlu0 %v1496_v1, %s1427_s7 }
  0x8c   : > { %v640_v15 = vpop.permute.xlu1 %639 }
  0x8e   : > { %v642_v17 = vpop.permute.xlu0 %641 }
  0x8f   : > { %v646_v26 = vsel %vm645_vm2, %v640_v15, %v642_v17 }
  0x90   : > { %v736_v19 = vpop.permute.xlu1 %735 }
  0x92   : > { %v644_v21 = vpop.permute.xlu0 %643 }
  0x93   : > { %v647_v22 = vsel %vm645_vm2, %v642_v17, %v644_v21 }
  0x94   : > { %1280 = vmatprep.subr.msk.mxu0 %vm260_vm1, %v647_v22  ;;  %v250_v25 = vpop.permute.xlu1 %249 }
  0x95   : > { %1281 = vmatpush1.msk.msra.mxu0 %vm260_vm1, %v646_v26 }
  0x96   : > { %v738_v27 = vpop.permute.xlu0 %737  ;;  %1282 = vmatmul.mubr.msk.f32.vlgmr.msra.gmra.mrb[0].mxu0 %vm256_vm3, %v1279_v24 }
  0x97   : > { %v741_v28 = vsel %vm739_vm4, %v736_v19, %v738_v27  ;;  %821 = vmatprep.mubr.f32.mxu0 %v1422_v4 }
  0x98   : > { %v745_v29 = vsel %vm423_vm5, %v741_v28, 0.0  ;;  %v734_v30 = vpop.permute.xlu1 %733  ;;  %v1133_v28 = vld [vmem:[#allocation2] sm:$0xff] (!%p1299_p10) }
  0x99   : > { %v740_v31 = vsel %vm739_vm4, %v734_v30, %v736_v19  ;;  %1284 = vmatprep.subr.msk.mxu0 %vm260_vm1, %v745_v29 }
  0x9a   : > { %v744_v33 = vsel %vm422_vm6, %v740_v31, 0.0  ;;  %v252_v34 = vpop.permute.xlu0 %251  ;;  %v1140_v31 = vld [vmem:[#allocation3] sm:$0xff] (!%p1299_p10) }
  0x9b   : > { %1285 = vmatpush1.msk.msra.mxu0 %vm260_vm1, %v744_v33  ;;  %v255_v36 = vsel %vm253_vm7, %v250_v25, %v252_v34 }
  0x9c   : > { %1265 = vmatprep.subr.msk.mxu1 %vm260_vm1, %v255_v36  ;;  %v838_v38 = vpop.permute.xlu1 %837 }
  0x9e   : > { %v248_v39 = vpop.permute.xlu0 %247  ;;  %1286 = vmatmul.mubr.msk.f32.vlgmr.msra.gmra.mrb[0].mxu0 %vm256_vm3, %v1283_v37 }
  0x9f   : > { %v254_v42 = vsel %vm253_vm7, %v248_v39, %v250_v25  ;;  %923 = vmatprep.mubr.f32.mxu0 %v1422_v4 }
  0xa0   : > { %1266 = vmatpush1.msk.msra.mxu1 %vm260_vm1, %v254_v42  ;;  %v836_v44 = vpop.permute.xlu1 %835 }
  0xa1   : > { %1267 = vmatmul.mubr.msk.f32.vlgmr.msra.gmra.mrb[0].mxu1 %vm256_vm3, %v1264_v40  ;;  %1268 = vmatprep.subr.msk.mxu1 %vm260_vm1, %v241_v41  ;;  %v842_v45 = vsel %vm841_vm10, %v836_v44, %v838_v38 }
  0xa2   : > { %v840_v46 = vpop.permute.xlu0 %839  ;;  %1269 = vmatpush1.msk.msra.mxu1 %vm260_vm1, %v240_v43  ;;  %409 = vmatprep.mubr.f32.mxu1 %v1422_v4  ;;  %v846_v51 = vsel %vm227_vm9, %v842_v45, 0.0 }
  0xa3   : > { %v843_v47 = vsel %vm841_vm10, %v838_v38, %v840_v46 }
  0xa4   : > { %v847_v48 = vsel %vm228_vm8, %v843_v47, 0.0  ;;  %v438_v49 = vpop.permute.xlu1 %437 }
  0xa5   : > { %1288 = vmatprep.subr.msk.mxu0 %vm260_vm1, %v847_v48 }
  0xa6   : > { %v436_v52 = vpop.permute.xlu0 %435  ;;  %1289 = vmatpush1.msk.msra.mxu0 %vm260_vm1, %v846_v51 }
  0xa7   : > { %v441_v54 = vsel %vm439_vm11, %v436_v52, %v438_v49  ;;  %1290 = vmatmul.mubr.msk.f32.vlgmr.msra.gmra.mrb[0].mxu0 %vm256_vm3, %v1287_v50 }
  0xa8   : > { %v445_v55 = vsel %vm423_vm5, %v441_v54, 0.0  ;;  %v942_v56 = vpop.permute.xlu1 %941  ;;  %1019 = vmatprep.mubr.f32.mxu0 %v1422_v4 }
  0xa9   : > { %1272 = vmatprep.subr.msk.mxu1 %vm260_vm1, %v445_v55  ;;  %1270 = vmatmul.mubr.msk.f32.vlgmr.msra.gmra.mrb[0].mxu1 %vm256_vm3, %v242_v53 }
  0xaa   : > { %v434_v57 = vpop.permute.xlu0 %433  ;;  %521 = vmatprep.mubr.f32.mxu1 %v1422_v4 }
  0xab   : > { %v440_v58 = vsel %vm439_vm11, %v434_v57, %v436_v52 }
  0xac   : > { %v444_v59 = vsel %vm422_vm6, %v440_v58, 0.0  ;;  %v940_v60 = vpop.permute.xlu1 %939 }
  0xad   : > { %1273 = vmatpush1.msk.msra.mxu1 %vm260_vm1, %v444_v59  ;;  %v946_v1 = vsel %vm945_vm12, %v940_v60, %v942_v56 }
  0xae   : > { %v944_v61 = vpop.permute.xlu0 %943 }
  0xaf   : > { %v947_v63 = vsel %vm945_vm12, %v942_v56, %v944_v61 }
  0xb0   : > { %v540_v2 = vpop.permute.xlu1 %539  ;;  %1292 = vmatprep.subr.msk.mxu0 %vm260_vm1, %v947_v63 }
  0xb1   : > { %1293 = vmatpush1.msk.msra.mxu0 %vm260_vm1, %v946_v1  ;;  %1274 = vmatmul.mubr.msk.f32.vlgmr.msra.gmra.mrb[0].mxu1 %vm256_vm3, %v1271_v62 }
  0xb2   : > { %v538_v3 = vpop.permute.xlu0 %537  ;;  %1294 = vmatmul.mubr.msk.f32.vlgmr.msra.gmra.mrb[0].mxu0 %vm256_vm3, %v1291_v0  ;;  %623 = vmatprep.mubr.f32.mxu1 %v1422_v4 }
  0xb3   : > { %v543_v5 = vsel %vm541_vm13, %v538_v3, %v540_v2  ;;  %1121 = vmatprep.mubr.f32.mxu0 %v1422_v4  ;;  %v1295_v4 = vld [vmem:[%s1656_s1 + $0x40] sm:$0xff] }
  0xb4   : > { %v547_v6 = vsel %vm228_vm8, %v543_v5, 0.0  ;;  %v1038_v7 = vpop.permute.xlu1 %1037 }
  0xb5   : > { %1276 = vmatprep.subr.msk.mxu1 %vm260_vm1, %v547_v6 }
  0xb6   : > { %v1036_v8 = vpop.permute.xlu0 %1035 }
  0xb7   : > { %v1041_v9 = vsel %vm1039_vm14, %v1036_v8, %v1038_v7 }
  0xb8   : > { %v1045_v10 = vsel %vm423_vm5, %v1041_v9, 0.0  ;;  %v1034_v11 = vpop.permute.xlu1 %1033 }
  0xb9   : > { %v1040_v12 = vsel %vm1039_vm14, %v1034_v11, %v1036_v8  ;;  %1296 = vmatprep.subr.msk.mxu0 %vm260_vm1, %v1045_v10 }
  0xba   : > { %v1044_v13 = vsel %vm422_vm6, %v1040_v12, 0.0  ;;  %v536_v14 = vpop.permute.xlu0 %535 }
  0xbb   : > { %v542_v15 = vsel %vm541_vm13, %v536_v14, %v538_v3  ;;  %1297 = vmatpush1.msk.msra.mxu0 %vm260_vm1, %v1044_v13 }
  0xbc   : > { %v546_v17 = vsel %vm227_vm9, %v542_v15, 0.0  ;;  %1298 = vmatmul.mubr.msk.f32.vlgmr.msra.gmra.mrb[0].mxu0 %vm256_vm3, %v1295_v4 }
  0xbd   : > { %1277 = vmatpush1.msk.msra.mxu1 %vm260_vm1, %v546_v17 }
  0xbe   : > { %1278 = vmatmul.mubr.msk.f32.vlgmr.msra.gmra.mrb[0].mxu1 %vm256_vm3, %v1275_v16 }
 0x18d   : > { %1132 = sbr.rel (%p1299_p10) target bundleno = 556 (0x22c), region = 40 }
 0x18f   : > { %v1123_v18 = vpop.f32.mrb[0].mxu0 }
 0x190   : > { %v1125_v19 = vpop.f32.mrb[1].mxu0 }
 0x191   : > { %v625_v20 = vpop.f32.mrb[0].mxu1 }
 0x192   : > { %v1304_v21 = vadd.f32 %v1123_v18, %v625_v20  ;;  %v627_v22 = vpop.f32.mrb[1].mxu1 }
 0x193   : > { %v1305_v23 = vadd.f32 %v1125_v19, %v627_v22 }
 0x194   : > { %v1141_v25 = vmul.f32 %v1304_v21, %v1304_v21 }
 0x195   : > { %v1134_v24 = vadd.f32 %v1305_v23, %v1304_v21  ;;  %v1142_v26 = vmul.f32 %v1305_v23, %v1305_v23 }
 0x197   : > { %1135 = vadd.xlane.f32.xlu0 %v1134_v24  ;;  %v1143_v27 = vadd.f32 %v1142_v26, %v1141_v25 }
 0x19b   : > { %1144 = vadd.xlane.f32.xlu0 %v1143_v27 }
 0x224   : > { %v1136_v29 = vpop.xlane.xlu0 %1135 }
 0x225   : > { %v1137_v30 = vadd.f32 %v1136_v29, %v1133_v28 }
 0x227   : > { %1139 = vst.msk [vmem:[#allocation2] sm:$0xff] %vm1138_vm15, %v1137_v30 }
 0x228   : > { %v1145_v32 = vpop.xlane.xlu0 %1144 }
 0x229   : > { %v1146_v33 = vadd.f32 %v1145_v32, %v1140_v31 }
 0x22b   : > { %1147 = vst.msk [vmem:[#allocation3] sm:$0xff] %vm1138_vm15, %v1146_v33 }
 0x22c PF: > { %p1300_p11 = scmp.ne.s32.totalorder %s1405_s13, 1 }
 0x22d   : > { %v1429_v36 = vmov (!%p1300_p11), 0   ;;  %v1161_v39 = vld [vmem:[%s1657_s2] sm:$0xff] (!%p1300_p11)  ;;  %v1430_v40 = vmov (!%p1300_p11), 1  }
 0x22e   : > { %1151 = sbr.rel (%p1300_p11) target bundleno = 717 (0x2cd), region = 44  ;;  %v1152_v34 = vld [vmem:[#allocation2] sm:$0xff] (!%p1300_p11)  ;;  %1374 = vset.pattern.permute.xlu0 (!%p1300_p11), %v1429_v36  ;;  %1375 = vset.pattern.permute.xlu1 (!%p1300_p11), %v1430_v40 }
 0x22f   : > { %v1153_v37 = vmul.f32 (!%p1300_p11), 0.001953125, %v1152_v34  ;;  %1179 = vperm.xlu1 (!%p1300_p11), %1375, %v1161_v39  }
 0x231   : > { %1164 = vperm.xlu0 (!%p1300_p11), %1374, %v1153_v37   ;;  %v1156_v41 = vmul.f32 (!%p1300_p11), %v1153_v37, %v1153_v37 }
 0x232   : > { %v1154_v35 = vld [vmem:[#allocation3] sm:$0xff] (!%p1300_p11) }
 0x233   : > { %v1155_v38 = vmul.f32 (!%p1300_p11), 0.001953125, %v1154_v35 }
 0x235   : > { %v1157_v42 = vsub.f32 %v1155_v38, %v1156_v41 }
 0x237   : > { %v1158_v43 = vmax.f32 %v1157_v42, 0.0 }
 0x239   : > { %v1159_v44 = vadd.f32 1e-05, %v1158_v43 }
 0x23b   : > { %1377 = vrsqrt.f32 %v1159_v44 }
 0x245   : > { %v1378_v45 = vpop.eup %1377 }
 0x246   : > { %v1169_v46 = vmul.f32 %v1378_v45, %v1161_v39 }
 0x248   : > { %1172 = vperm.xlu0 %1374, %v1169_v46  }
 0x24c   : > { %1376 = vset.pattern.permute.xlu0 %v1430_v40 }
 0x2ae   : > { %v1180_v51 = vpop.permute.xlu1 %1179 }
 0x2b0   : > { %v1165_v47 = vpop.permute.xlu0 %1164 }
 0x2b1   : > { %v1167_v48 = vsub.f32 %v1304_v21, %v1165_v47  ;;  %v1168_v49 = vsub.f32 %v1305_v23, %v1165_v47 }
 0x2c7   : > { %v1173_v50 = vpop.permute.xlu0 %1172 }
 0x2c8   : > { %v1175_v52 = vmul.f32 %v1173_v50, %v1167_v48  ;;  %v1176_v53 = vmul.f32 %v1173_v50, %v1168_v49 }
 0x2ca   : > { %v1182_v54 = vadd.f32 %v1180_v51, %v1175_v52  ;;  %v1183_v55 = vadd.f32 %v1180_v51, %v1176_v53 }
 0x2cc   : > { %1184 = vst [vmem:[%s1493_s27] sm:$0xff] %v1182_v54  ;;  %1185 = vst [vmem:[%s1493_s27 + $0x8] sm:$0xff] %v1183_v55 }
 0x2cd PF: > { %s13_s16 = sadd.s32 1, %s1417_s16   ;;  %s1659_s12 = smov %s1409_s14 }
 0x2ce   : > { %p10_p12 = scmp.ge.s32.totalorder %s13_s16, 6   ;;  %s1660_s13 = smov %s1413_s15 }
 0x2cf   : > { %s1661_s14 = smov %s1664_s17  ;;  %s1662_s15 = smov %s1668_s18 }
 0x2d0   :  { %12 = sbr.rel (!%p10_p12) target bundleno = 3 (0x3), region = 82 }

</bundles_post_ra>
